<compile_context>
chip_gen: v7x
topology: tpu7x:2x2x1
jax: 0.10.0
libtpu: 0.0.40
codegen_flags: <defaults>
</compile_context>

<pallas_src>
import functools

import jax
import jax.numpy as jnp
from jax import lax
from jax.experimental import pallas as pl
from jax.experimental.pallas import tpu as pltpu

LANE = 128
SUBLANE = 8

# deterministic "module config": loss dict + weights
LOSS_WEIGHTS = {"mse": 0.7, "l1": 0.3}


def _combined_loss_kernel(x_ref, y_ref, o_ref, *,
                          w_mse, w_l1, total_rows, tile_rows, needs_mask):
    i = pl.program_id(0)

    d = x_ref[...].astype(jnp.float32) - y_ref[...].astype(jnp.float32)
    # Fused per-element contribution: w_mse * d^2 + w_l1 * |d|.
    contrib = w_mse * (d * d) + w_l1 * jnp.abs(d)            # (tile_rows, 128)

    if needs_mask:
        # Last block may extend past the array; mask out-of-bounds rows.
        # (jnp.where discards any garbage/NaN from the padded block region.)
        row_idx = lax.broadcasted_iota(jnp.int32, contrib.shape, 0) + i * tile_rows
        contrib = jnp.where(row_idx < total_rows, contrib, 0.0)

    # Reduce the leading axis with vreg-wise adds (pure VPU) into a lane-dense
    # (8, 128) per-block partial sum; no cross-lane reduction in the kernel.
    o_ref[0] = contrib.reshape(tile_rows // SUBLANE, SUBLANE, LANE).sum(axis=0)


def combined_loss(x, y, *, tile_rows=4096):
    """Weighted MSE + L1 loss over all elements of x, y (same shape)."""
    assert x.shape == y.shape
    n_elems = x.size

    # Flatten (keep original dtype; the kernel casts to f32).
    xf = x.reshape(-1)
    yf = y.reshape(-1)

    # Pad only to the minimal (8, 128) alignment — decoupled from tile_rows.
    align = SUBLANE * LANE
    padded = ((n_elems + align - 1) // align) * align
    if padded != n_elems:
        pad = padded - n_elems
        # Identical zero padding on both inputs -> padded diffs contribute 0.
        xf = jnp.pad(xf, (0, pad))
        yf = jnp.pad(yf, (0, pad))
    M = padded // LANE                      # multiple of 8
    x2 = xf.reshape(M, LANE)
    y2 = yf.reshape(M, LANE)

    tile_rows = min(tile_rows, M)           # both are multiples of 8
    num_blocks = pl.cdiv(M, tile_rows)
    needs_mask = (M % tile_rows) != 0

    kernel = functools.partial(
        _combined_loss_kernel,
        w_mse=float(LOSS_WEIGHTS["mse"]),
        w_l1=float(LOSS_WEIGHTS["l1"]),
        total_rows=M,
        tile_rows=tile_rows,
        needs_mask=needs_mask,
    )

    partials = pl.pallas_call(
        kernel,
        out_shape=jax.ShapeDtypeStruct((num_blocks, SUBLANE, LANE), jnp.float32),
        grid_spec=pltpu.PrefetchScalarGridSpec(
            num_scalar_prefetch=0,
            grid=(num_blocks,),
            in_specs=[
                pl.BlockSpec((tile_rows, LANE), lambda i: (i, 0)),
                pl.BlockSpec((tile_rows, LANE), lambda i: (i, 0)),
            ],
            out_specs=pl.BlockSpec((1, SUBLANE, LANE), lambda i: (i, 0, 0)),
        ),
        # Each grid step writes its own output block -> truly parallel
        # (megacore-shardable on v7x).
        compiler_params=pltpu.CompilerParams(
            dimension_semantics=("parallel",)),
    )(x2, y2)

    # Final tiny reduction (num_blocks * 8 * 128 f32) done by XLA.
    return jnp.sum(partials) * (1.0 / float(n_elems))


def combined_loss_ref(x, y):
    d = x.astype(jnp.float32) - y.astype(jnp.float32)
    mse = jnp.mean(d * d)
    l1 = jnp.mean(jnp.abs(d))
    return LOSS_WEIGHTS["mse"] * mse + LOSS_WEIGHTS["l1"] * l1


if __name__ == "__main__":
    key = jax.random.PRNGKey(0)
    kx, ky = jax.random.split(key)
    # small shapes consistent with an image-loss module: NCHW
    x = jax.random.normal(kx, (2, 4, 16, 16), dtype=jnp.float32)
    y = jax.random.normal(ky, (2, 4, 16, 16), dtype=jnp.float32)

    out = jax.block_until_ready(combined_loss(x, y))
    ref = jax.block_until_ready(combined_loss_ref(x, y))

    assert jnp.allclose(out, ref, rtol=1e-5, atol=1e-5), (out, ref)
    print("KERNEL_OK")
</pallas_src>

<mosaic_0001>
module attributes {stable_mosaic.version = 11 : i64} {
  func.func @_combined_loss_kernel(%arg0: i32, %arg1: memref<16x128xf32, #tpu.memory_space<vmem>>, %arg2: memref<16x128xf32, #tpu.memory_space<vmem>>, %arg3: memref<1x8x128xf32, #tpu.memory_space<vmem>>) attributes {dimension_semantics = [#tpu.dimension_semantics<parallel>], iteration_bounds = array<i64: 1>, scalar_prefetch = 0 : i64, scratch_operands = 0 : i64, tpu.core_type = #tpu.core_type<tc>, window_params = [{transform_indices = @transform_0, window_bounds = array<i64: 16, 128>}, {transform_indices = @transform_1, window_bounds = array<i64: 16, 128>}, {transform_indices = @transform_2, window_bounds = array<i64: 1, 8, 128>}]} {
    %c0 = arith.constant 0 : index
    %c0_0 = arith.constant 0 : index
    %0 = vector.load %arg1[%c0, %c0_0] : memref<16x128xf32, #tpu.memory_space<vmem>>, vector<16x128xf32>
    %c0_1 = arith.constant 0 : index
    %c0_2 = arith.constant 0 : index
    %1 = vector.load %arg2[%c0_1, %c0_2] : memref<16x128xf32, #tpu.memory_space<vmem>>, vector<16x128xf32>
    %2 = arith.subf %0, %1 : vector<16x128xf32>
    %3 = arith.mulf %2, %2 : vector<16x128xf32>
    %cst = arith.constant 0.699999988 : f32
    %4 = vector.broadcast %cst : f32 to vector<16x128xf32>
    %5 = arith.mulf %4, %3 : vector<16x128xf32>
    %6 = math.absf %2 : vector<16x128xf32>
    %cst_3 = arith.constant 3.000000e-01 : f32
    %7 = vector.broadcast %cst_3 : f32 to vector<16x128xf32>
    %8 = arith.mulf %7, %6 : vector<16x128xf32>
    %9 = arith.addf %5, %8 : vector<16x128xf32>
    %10 = vector.shape_cast %9 : vector<16x128xf32> to vector<2x8x128xf32>
    %cst_4 = arith.constant dense<0.000000e+00> : vector<8x128xf32>
    %11 = vector.multi_reduction <add>, %10, %cst_4 [0] : vector<2x8x128xf32> to vector<8x128xf32>
    %c0_5 = arith.constant 0 : index
    %c0_6 = arith.constant 0 : index
    %c0_7 = arith.constant 0 : index
    %12 = vector.load %arg3[%c0_5, %c0_6, %c0_7] : memref<1x8x128xf32, #tpu.memory_space<vmem>>, vector<1x8x128xf32>
    %13 = vector.shape_cast %12 : vector<1x8x128xf32> to vector<8x128xf32>
    %14 = vector.shape_cast %11 : vector<8x128xf32> to vector<1x8x128xf32>
    tpu.vector_store %arg3[%c0_5, %c0_6, %c0_7], %14 {strides = array<i32>} : memref<1x8x128xf32, #tpu.memory_space<vmem>>, vector<1x8x128xf32>,
    return
  }
  func.func @transform_0(%arg0: i32) -> (i32, i32) {
    %c0_i32 = arith.constant 0 : i32
    %c0_i32_0 = arith.constant 0 : i32
    return %arg0, %c0_i32 : i32, i32
  }
  func.func @transform_1(%arg0: i32) -> (i32, i32) {
    %c0_i32 = arith.constant 0 : i32
    %c0_i32_0 = arith.constant 0 : i32
    return %arg0, %c0_i32 : i32, i32
  }
  func.func @transform_2(%arg0: i32) -> (i32, i32, i32) {
    %c0_i32 = arith.constant 0 : i32
    %c0_i32_0 = arith.constant 0 : i32
    %c0_i32_1 = arith.constant 0 : i32
    return %arg0, %c0_i32, %c0_i32_0 : i32, i32, i32
  }
}

</mosaic_0001>

<bundles_post_ra>
// kernel: tpu_custom_call.1
= control target key start
LH: loop header
LB: loop body
LE: loop exit
PB: predicated region body
PF: predicated region fallthrough
CT: control target
= control target key end

     0   :  { %7 = vsyncpa [#allocation3], 0  ;;  %s207_s0 = inlined_call_operand.hbm [shape: f32[16,128], index: 0, kind: input, shape index: {}]   ;;  %s208_s1 = inlined_call_operand.hbm [shape: f32[16,128], index: 1, kind: input, shape index: {}]   ;;  %s209_s2 = inlined_call_operand.hbm [shape: f32[1,8,128], index: 2, kind: output, shape index: {}]  }
   0x1   :  { %8 = vsyncpa [#allocation6], 0 }
   0x2   :  { %9 = vsyncpa [#allocation4], 0  ;;  %s151_s9 = smov [#allocation2]   ;;  %s79_s13 = scalar_lea.hbm %s207_s0, 256 }
   0x3   :  { %s15_s10 = sshll.u32 %s151_s9, 4  ;;  %p80_p0 = scmp.ne.s32.totalorder %s207_s0, %s79_s13  ;;  %s16_s10 = int_to_ptr.vmem [resolvable:$true] %s15_s10 }
   0x4   :  { %p83_p1 = scmp.lt.u32.totalorder %s79_s13, %s207_s0 }
   0x6   :  { %p85_p2 = pnand %p83_p1, %p80_p0 }
   0x8   :  { %88 = shalt.err (!%p85_p2)
}
   0x9   :  { %s89_s18 = scalar_lea.vmem %s16_s10, 256  ;;  %p94_p4 = scmp.lt.s32.totalorder %s16_s10, %s16_s10 }
   0xa   :  { %p90_p3 = scmp.ne.s32.totalorder %s16_s10, %s89_s18  ;;  %p95_p5 = scmp.lt.s32.totalorder %s89_s18, %s89_s18 }
   0xc   :  { %p96_p6 = por %p95_p5, %p94_p4 }
   0xe   :  { %p97_p7 = pnand %p96_p6, %p90_p3 }
  0x10   :  { %100 = shalt.err (!%p97_p7)
}
  0x11   :  { %s152_s19 = smov 128   ;;  %s153_s20 = smov 8  }
  0x12   :  { %21 = dma.hbm_to_vmem [thread:$0]  %s207_s0, 256, %s16_s10, [#allocation3], %s152_s19, %s152_s19, %s153_s20  }
  0x13   :  { %s154_s23 = smov [#allocation5]   ;;  %s101_s27 = scalar_lea.hbm %s208_s1, 256 }
  0x14   :  { %s27_s24 = sshll.u32 %s154_s23, 4  ;;  %p102_p8 = scmp.ne.s32.totalorder %s208_s1, %s101_s27  ;;  %s28_s24 = int_to_ptr.vmem [resolvable:$true] %s27_s24 }
  0x15   :  { %p105_p9 = scmp.lt.u32.totalorder %s101_s27, %s208_s1 }
  0x17   :  { %p107_p10 = pnand %p105_p9, %p102_p8 }
  0x19   :  { %110 = shalt.err (!%p107_p10)
}
  0x1a   :  { %s111_s4 = scalar_lea.vmem %s28_s24, 256  ;;  %p116_p12 = scmp.lt.s32.totalorder %s28_s24, %s28_s24 }
  0x1b   :  { %p112_p11 = scmp.ne.s32.totalorder %s28_s24, %s111_s4  ;;  %p117_p13 = scmp.lt.s32.totalorder %s111_s4, %s111_s4 }
  0x1d   :  { %p118_p0 = por %p117_p13, %p116_p12 }
  0x1f   :  { %p119_p1 = pnand %p118_p0, %p112_p11 }
  0x21   :  { %122 = shalt.err (!%p119_p1)
}
  0x22   :  { %33 = dma.hbm_to_vmem [thread:$0]  %s208_s1, 256, %s28_s24, [#allocation6], %s152_s19, %s152_s19, %s153_s20  }
  0x23   :  { %145 = dma.done.wait [#allocation3], 256  }
  0x24   :  { %146 = vsyncadd [#allocation3], 4294967040 }
  0x25   :  { %147 = dma.done.wait [#allocation6], 256  }
  0x26   :  { %148 = vsyncadd [#allocation6], 4294967040  ;;  %v40_v0 = vld [vmem:[#allocation2] sm:$0xff]  ;;  %v41_v1 = vld [vmem:[#allocation2 + $0x8] sm:$0xff]  ;;  %s155_s1 = smov [#allocation7]  }
  0x27   :  { %v42_v2 = vld [vmem:[#allocation5] sm:$0xff]  ;;  %v43_v3 = vld [vmem:[#allocation5 + $0x8] sm:$0xff]  ;;  %s64_s6 = sshll.u32 %s155_s1, 4  ;;  %s65_s6 = int_to_ptr.vmem [resolvable:$true] %s64_s6 }
  0x28   :  { %v44_v4 = vsub.f32 %v40_v0, %v42_v2  ;;  %v45_v5 = vsub.f32 %v41_v1, %v43_v3  ;;  %s123_s7 = scalar_lea.vmem %s65_s6, 128  ;;  %p128_p3 = scmp.lt.s32.totalorder %s65_s6, %s65_s6 }
  0x29   :  { %p124_p2 = scmp.ne.s32.totalorder %s65_s6, %s123_s7  ;;  %p129_p4 = scmp.lt.s32.totalorder %s123_s7, %s123_s7 }
  0x2a   :  { %v46_v6 = vmul.f32 %v44_v4, %v44_v4  ;;  %v50_v7 = vand.u32 2147483647, %v44_v4  ;;  %v47_v8 = vmul.f32 %v45_v5, %v45_v5  ;;  %v51_v9 = vand.u32 2147483647, %v45_v5 }
  0x2b   :  { %p130_p5 = por %p129_p4, %p128_p3 }
  0x2c   :  { %v48_v10 = vmul.f32 0.7, %v46_v6  ;;  %v52_v11 = vmul.f32 0.3, %v50_v7  ;;  %v49_v12 = vmul.f32 0.7, %v47_v8 }
  0x2d   :  { %v53_v13 = vmul.f32 0.3, %v51_v9  ;;  %p131_p6 = pnand %p130_p5, %p124_p2 }
  0x2e   :  { %v54_v14 = vadd.f32 %v52_v11, %v48_v10 }
  0x2f   :  { %v55_v15 = vadd.f32 %v53_v13, %v49_v12 }
  0x31   :  { %v56_v16 = vadd.f32 %v55_v15, %v54_v14 }
  0x33   :  { %57 = vst [vmem:[#allocation7] sm:$0xff] %v56_v16 }
  0x34   :  { %134 = shalt.err (!%p131_p6)
}
  0x35   :  { %s135_s10 = scalar_lea.hbm %s209_s2, 128 }
  0x36   :  { %p136_p7 = scmp.ne.s32.totalorder %s209_s2, %s135_s10  ;;  %p139_p8 = scmp.lt.u32.totalorder %s135_s10, %s209_s2 }
  0x38   :  { %p141_p9 = pnand %p139_p8, %p136_p7 }
  0x3a   :  { %144 = shalt.err (!%p141_p9)
}
  0x3b   :  { %67 = dma.vmem_to_hbm [thread:$0]  %s65_s6, 128, %s209_s2, [#allocation4]  }
  0x3c   :  { %149 = dma.done.wait [#allocation4], 128  }
  0x3d   :  { %150 = vsyncadd [#allocation4], 4294967168 }
  0x3e   :  { %71 = vsyncpa [#allocation3], 1 }
  0x3f   :  { %72 = vsyncpa [#allocation6], 1 }
  0x40   :  { %73 = vsyncpa [#allocation4], 1 }

</bundles_post_ra>
